<compile_context>
chip_gen: v7x
topology: tpu7x:2x2x1
jax: 0.10.0
libtpu: 0.0.40
codegen_flags: <defaults>
</compile_context>

<pallas_src>
import functools

import jax
import jax.numpy as jnp
from jax.experimental import pallas as pl
from jax.experimental.pallas import tpu as pltpu


def _round_up(x, m):
    return -(-x // m) * m


def _classwise_linear_kernel(x_ref, w_ref, b_ref, o_ref, acc_ref):
    """One grid step: `cb` classes x `TB` batch rows x `tk` input features.

    x_ref  : (cb, TB, tk)  class-major input block (compute dtype)
    w_ref  : (cb, Np, tk)  weights, PyTorch nn.Linear layout (no transpose)
    b_ref  : (cb, Np)      f32 biases
    o_ref  : (cb, TB, Np)  class-major output block, lane-dense (Np % 128 == 0)
    acc_ref: (cb, TB, Np)  f32 VMEM accumulator, resident across the K axis
    """
    k = pl.program_id(2)

    @pl.when(k == 0)
    def _init():
        acc_ref[...] = jnp.zeros_like(acc_ref)

    # Batched A @ B^T: leading (class) batch dim on both operands, contraction
    # on the last dim of both -> MXU-native, no in-kernel transposes.
    acc_ref[...] += jnp.einsum(
        "cbk,cnk->cbn", x_ref[...], w_ref[...],
        preferred_element_type=jnp.float32)

    @pl.when(k == pl.num_programs(2) - 1)
    def _finalize():
        out = acc_ref[...] + b_ref[...][:, None, :]
        o_ref[...] = out.astype(o_ref.dtype)


def _vmem_limits():
    """(vmem_limit_bytes for CompilerParams, per-grid-step VMEM budget)."""
    try:
        phys = int(pltpu.get_tpu_info().vmem_capacity_bytes)
    except Exception:
        phys = 64 << 20                    # v7x has the smallest VMEM; be safe.
    limit = min((phys * 3) // 4, 96 << 20)  # ~96 MiB on v5e/v6e, ~48 MiB on v7x
    return limit, limit // 3                # ~32 MiB / ~16 MiB per grid step


def _choose_class_block(nclasses, cb_budget, prefer_split):
    """Largest class block that fits the budget, keeps the 2-D (cb, Np) bias
    block layout-legal (cb % 8 == 0 or cb == nclasses) and minimizes class
    padding.  `prefer_split` caps it so the class axis has >= 2 grid steps
    (v7x TensorCore sharding / pipeline overlap)."""
    if nclasses <= 8:
        return nclasses, nclasses           # one block == full class dim
    cb_budget = max(8, (cb_budget // 8) * 8)
    if prefer_split:
        cb_budget = min(cb_budget, max(8, (_round_up(nclasses, 8) // 2) // 8 * 8))
    best_cb, best_key = 8, None
    for cand in range(8, cb_budget + 1, 8):
        pad = _round_up(nclasses, cand) - nclasses
        key = (pad, -cand)                   # least padding, then biggest block
        if best_key is None or key < best_key:
            best_cb, best_key = cand, key
    return best_cb, _round_up(nclasses, best_cb)


@functools.partial(jax.jit, static_argnames=("compute_dtype",))
def classwise_linear(x, weights, biases, *, compute_dtype=None):
    """x: (B, nclasses, in_feats)
    weights: (nclasses, out_feats, in_feats)   (PyTorch nn.Linear layout)
    biases:  (nclasses, out_feats)
    returns: (B, nclasses, out_feats) in x.dtype.
    """
    B, C, K = x.shape
    N = weights.shape[1]
    assert weights.shape == (C, N, K), (weights.shape, (C, N, K))
    assert biases.shape == (C, N), (biases.shape, (C, N))

    out_dtype = x.dtype
    cdt = jnp.dtype(x.dtype) if compute_dtype is None else jnp.dtype(compute_dtype)
    csz = cdt.itemsize
    osz = jnp.dtype(out_dtype).itemsize

    # ---- tile sizes --------------------------------------------------------
    Np = _round_up(N, 128)                    # lane-dense output stores
    if B <= 256:
        TB, Bp = B, B                         # block == full batch dim
    else:
        TB, Bp = 256, _round_up(B, 256)
    if K <= 2048:
        tk, Kp = K, K                         # one K step, block == full dim
    else:
        tk, Kp = 512, _round_up(K, 512)

    vmem_limit, step_budget = _vmem_limits()
    # Per-class bytes in one grid step: double-buffered x/w/bias/out blocks
    # plus the f32 accumulator scratch and slack for the bias-add/cast temp.
    bytes_per_class = (
        2 * (TB * tk * csz + Np * tk * csz + Np * 4 + TB * Np * osz)
        + 2 * TB * Np * 4)
    cb_budget = max(1, step_budget // bytes_per_class)
    nb = Bp // TB
    cb, Cp = _choose_class_block(C, cb_budget, prefer_split=(nb == 1 and C > 8))
    nc, nk = Cp // cb, Kp // tk

    # ---- wrapper-side layout: cast, class-major transpose, zero padding ----
    x_cm = jnp.transpose(x.astype(cdt), (1, 0, 2))                 # (C, B, K)
    x_cm = jnp.pad(x_cm, ((0, Cp - C), (0, Bp - B), (0, Kp - K)))
    w_p = jnp.pad(weights.astype(cdt), ((0, Cp - C), (0, Np - N), (0, Kp - K)))
    b_p = jnp.pad(biases.astype(jnp.float32), ((0, Cp - C), (0, Np - N)))

    cost = pl.CostEstimate(
        flops=2 * Bp * Cp * Kp * Np,
        transcendentals=0,
        bytes_accessed=(x_cm.size * csz + w_p.size * csz + b_p.size * 4
                        + Cp * Bp * Np * osz))

    out_cm = pl.pallas_call(
        _classwise_linear_kernel,
        out_shape=jax.ShapeDtypeStruct((Cp, Bp, Np), out_dtype),
        grid_spec=pltpu.PrefetchScalarGridSpec(
            num_scalar_prefetch=0,
            grid=(nc, nb, nk),
            in_specs=[
                # x: class-major, blocked over (class, batch, K).
                pl.BlockSpec((cb, TB, tk), lambda c, b, k: (c, b, k)),
                # weights: PyTorch layout, constant across the batch axis.
                pl.BlockSpec((cb, Np, tk), lambda c, b, k: (c, 0, k)),
                # bias: 2-D block, constant across batch and K axes.
                pl.BlockSpec((cb, Np), lambda c, b, k: (c, 0)),
            ],
            out_specs=pl.BlockSpec((cb, TB, Np), lambda c, b, k: (c, b, 0)),
            scratch_shapes=[pltpu.VMEM((cb, TB, Np), jnp.float32)],
        ),
        compiler_params=pltpu.CompilerParams(
            dimension_semantics=("parallel", "parallel", "arbitrary"),
            vmem_limit_bytes=vmem_limit,
        ),
        cost_estimate=cost,
    )(x_cm, w_p, b_p)

    # Slice off padding and restore (B, nclasses, out_feats) with one fused
    # XLA transpose (deliberately kept out of the kernel).
    return jnp.transpose(out_cm[:C, :B, :N], (1, 0, 2))


def _init_params(key, in_feats, out_feats, nclasses):
    """nn.Linear default init: uniform(-1/sqrt(in), 1/sqrt(in))."""
    bound = 1.0 / (in_feats ** 0.5)
    kw, kb = jax.random.split(key)
    weights = jax.random.uniform(
        kw, (nclasses, out_feats, in_feats), jnp.float32, -bound, bound)
    biases = jax.random.uniform(
        kb, (nclasses, out_feats), jnp.float32, -bound, bound)
    return weights, biases


def _reference(x, weights, biases):
    # Note: reference uses HIGHEST precision; the in-kernel f32 matmul may use
    # the default multi-pass path, so tolerances below are set deliberately.
    return jnp.einsum("bck,cnk->bcn", x, weights,
                      precision=jax.lax.Precision.HIGHEST) + biases[None]


if __name__ == "__main__":
    key = jax.random.PRNGKey(0)
    k1, k2, k3, k4 = jax.random.split(key, 4)

    # Case 1: f32, out_feats < 128 (exercises lane padding), nclasses <= 8.
    B, C, K, N = 2, 4, 32, 32
    x = jax.random.normal(k1, (B, C, K), jnp.float32)
    w, b = _init_params(k2, K, N, C)
    out = jax.block_until_ready(classwise_linear(x, w, b))
    ref = _reference(x, w, b)
    assert out.shape == (B, C, N) and out.dtype == x.dtype
    assert jnp.allclose(out, ref, atol=1e-4, rtol=1e-4), \
        float(jnp.max(jnp.abs(out - ref)))

    # Case 2: bf16 compute dtype (halved HBM weight stream), nclasses > 8
    # (exercises class blocking + class padding), out_feats not a mult. of 128.
    B2, C2, K2, N2 = 4, 12, 64, 96
    x2 = jax.random.normal(k3, (B2, C2, K2), jnp.float32)
    w2, b2 = _init_params(k4, K2, N2, C2)
    out2 = jax.block_until_ready(
        classwise_linear(x2, w2, b2, compute_dtype=jnp.bfloat16))
    ref2 = _reference(x2, w2, b2)
    assert out2.shape == (B2, C2, N2) and out2.dtype == x2.dtype
    assert jnp.allclose(out2, ref2, atol=3e-2, rtol=3e-2), \
        float(jnp.max(jnp.abs(out2 - ref2)))

    print("KERNEL_OK")
</pallas_src>

<mosaic_0001>
module attributes {stable_mosaic.version = 11 : i64} {
  func.func @_classwise_linear_kernel(%arg0: i32, %arg1: i32, %arg2: i32, %arg3: memref<4x2x32xf32, #tpu.memory_space<vmem>>, %arg4: memref<4x128x32xf32, #tpu.memory_space<vmem>>, %arg5: memref<4x128xf32, #tpu.memory_space<vmem>>, %arg6: memref<4x2x128xf32, #tpu.memory_space<vmem>>, %arg7: memref<4x2x128xf32, #tpu.memory_space<vmem>>) attributes {dimension_semantics = [#tpu.dimension_semantics<parallel>, #tpu.dimension_semantics<parallel>, #tpu.dimension_semantics<arbitrary>], iteration_bounds = array<i64: 1, 1, 1>, scalar_prefetch = 0 : i64, scratch_operands = 1 : i64, tpu.core_type = #tpu.core_type<tc>, window_params = [{transform_indices = @transform_0, window_bounds = array<i64: 4, 2, 32>}, {transform_indices = @transform_1, window_bounds = array<i64: 4, 128, 32>}, {transform_indices = @transform_2, window_bounds = array<i64: 4, 128>}, {transform_indices = @transform_3, window_bounds = array<i64: 4, 2, 128>}]} {
    %c0_i32 = arith.constant 0 : i32
    %0 = arith.cmpi eq, %arg2, %c0_i32 : i32
    %1 = arith.extui %0 : i1 to i32
    %c0_i32_0 = arith.constant 0 : i32
    %2 = arith.cmpi ne, %1, %c0_i32_0 : i32
    scf.if %2 {
      %cst_14 = arith.constant 0.000000e+00 : f32
      %12 = vector.broadcast %cst_14 : f32 to vector<4x2x128xf32>
      %c0_15 = arith.constant 0 : index
      %c0_16 = arith.constant 0 : index
      %c0_17 = arith.constant 0 : index
      %13 = vector.load %arg7[%c0_15, %c0_16, %c0_17] : memref<4x2x128xf32, #tpu.memory_space<vmem>>, vector<4x2x128xf32>
      tpu.vector_store %arg7[%c0_15, %c0_16, %c0_17], %12 {strides = array<i32>} : memref<4x2x128xf32, #tpu.memory_space<vmem>>, vector<4x2x128xf32>,
    } else {
    }
    %c0 = arith.constant 0 : index
    %c0_1 = arith.constant 0 : index
    %c0_2 = arith.constant 0 : index
    %3 = vector.load %arg7[%c0, %c0_1, %c0_2] : memref<4x2x128xf32, #tpu.memory_space<vmem>>, vector<4x2x128xf32>
    %c0_3 = arith.constant 0 : index
    %c0_4 = arith.constant 0 : index
    %c0_5 = arith.constant 0 : index
    %4 = vector.load %arg3[%c0_3, %c0_4, %c0_5] : memref<4x2x32xf32, #tpu.memory_space<vmem>>, vector<4x2x32xf32>
    %c0_6 = arith.constant 0 : index
    %c0_7 = arith.constant 0 : index
    %c0_8 = arith.constant 0 : index
    %5 = vector.load %arg4[%c0_6, %c0_7, %c0_8] : memref<4x128x32xf32, #tpu.memory_space<vmem>>, vector<4x128x32xf32>
    "tpu.trace_start"() <{level = 10 : i32, message = "cbk,cnk->cbn"}> : () -> ()
    %cst = arith.constant dense<0.000000e+00> : vector<4x2x128xf32>
    %6 = tpu.matmul %4, %5, %cst {dimension_numbers = #tpu.dot_dimension_numbers<[2], [2], [1], [1], [0, 0, 0, 1, 1, 1], [0], [0]>} : vector<4x2x32xf32>, vector<4x128x32xf32>, vector<4x2x128xf32> -> vector<4x2x128xf32>
    "tpu.trace_stop"() : () -> ()
    %7 = arith.addf %3, %6 : vector<4x2x128xf32>
    %c0_9 = arith.constant 0 : index
    %c0_10 = arith.constant 0 : index
    %c0_11 = arith.constant 0 : index
    %8 = vector.load %arg7[%c0_9, %c0_10, %c0_11] : memref<4x2x128xf32, #tpu.memory_space<vmem>>, vector<4x2x128xf32>
    tpu.vector_store %arg7[%c0_9, %c0_10, %c0_11], %7 {strides = array<i32>} : memref<4x2x128xf32, #tpu.memory_space<vmem>>, vector<4x2x128xf32>,
    %c0_i32_12 = arith.constant 0 : i32
    %9 = arith.cmpi eq, %arg2, %c0_i32_12 : i32
    %10 = arith.extui %9 : i1 to i32
    %c0_i32_13 = arith.constant 0 : i32
    %11 = arith.cmpi ne, %10, %c0_i32_13 : i32
    scf.if %11 {
      %c0_14 = arith.constant 0 : index
      %c0_15 = arith.constant 0 : index
      %c0_16 = arith.constant 0 : index
      %12 = vector.load %arg7[%c0_14, %c0_15, %c0_16] : memref<4x2x128xf32, #tpu.memory_space<vmem>>, vector<4x2x128xf32>
      %c0_17 = arith.constant 0 : index
      %c0_18 = arith.constant 0 : index
      %13 = vector.load %arg5[%c0_17, %c0_18] : memref<4x128xf32, #tpu.memory_space<vmem>>, vector<4x128xf32>
      %14 = vector.shape_cast %13 : vector<4x128xf32> to vector<4x1x128xf32>
      %15 = vector.broadcast %14 : vector<4x1x128xf32> to vector<4x2x128xf32>
      %16 = arith.addf %12, %15 : vector<4x2x128xf32>
      %c0_19 = arith.constant 0 : index
      %c0_20 = arith.constant 0 : index
      %c0_21 = arith.constant 0 : index
      %17 = vector.load %arg6[%c0_19, %c0_20, %c0_21] : memref<4x2x128xf32, #tpu.memory_space<vmem>>, vector<4x2x128xf32>
      tpu.vector_store %arg6[%c0_19, %c0_20, %c0_21], %16 {strides = array<i32>} : memref<4x2x128xf32, #tpu.memory_space<vmem>>, vector<4x2x128xf32>,
    } else {
    }
    return
  }
  func.func @transform_0(%arg0: i32, %arg1: i32, %arg2: i32) -> (i32, i32, i32) {
    %c0_i32 = arith.constant 0 : i32
    return %arg0, %arg1, %arg2 : i32, i32, i32
  }
  func.func @transform_1(%arg0: i32, %arg1: i32, %arg2: i32) -> (i32, i32, i32) {
    %c0_i32 = arith.constant 0 : i32
    %c0_i32_0 = arith.constant 0 : i32
    return %arg0, %c0_i32, %arg2 : i32, i32, i32
  }
  func.func @transform_2(%arg0: i32, %arg1: i32, %arg2: i32) -> (i32, i32) {
    %c0_i32 = arith.constant 0 : i32
    %c0_i32_0 = arith.constant 0 : i32
    return %arg0, %c0_i32 : i32, i32
  }
  func.func @transform_3(%arg0: i32, %arg1: i32, %arg2: i32) -> (i32, i32, i32) {
    %c0_i32 = arith.constant 0 : i32
    %c0_i32_0 = arith.constant 0 : i32
    return %arg0, %arg1, %c0_i32 : i32, i32, i32
  }
}

</mosaic_0001>

<bundles_post_ra>
// kernel: classwise_linear.1
= control target key start
LH: loop header
LB: loop body
LE: loop exit
PB: predicated region body
PF: predicated region fallthrough
CT: control target
= control target key end

     0   :  { %vm94_vm0 = vcmask 261120   ;;  %v1061_v0 = vmov 0.0|0.0   ;;  %v1062_v4 = vmov 0.0   ;;  %vm1063_vm2 = vmmov 0   ;;  %s1422_s1 = inlined_call_operand.vmem [shape: f32[4,128,32], index: 1, kind: input, shape index: {}]   ;;  %s1423_s0 = inlined_call_operand.vmem [shape: f32[4,2,32], index: 0, kind: input, shape index: {}]   ;;  %s1424_s2 = inlined_call_operand.vmem [shape: f32[4,128], index: 2, kind: input, shape index: {}]   ;;  %s1425_s3 = inlined_call_operand.vmem [shape: f32[4,2,128], index: 3, kind: output, shape index: {}]  }
   0x1   :  { %929 = vmatprep.subr.bf16.mxu0 %v1061_v0  ;;  %961 = vmatprep.subr.bf16.mxu1 %v1061_v0  ;;  %v30_v1 = vld [vmem:[%s1422_s1] sm:$0xff]  ;;  %v31_v2 = vld [vmem:[%s1422_s1 + $0x8] sm:$0xff]  ;;  %vm1095_vm1 = vmpackc.low %vm94_vm0, %vm94_vm0  ;;  %18 = vst [vmem:[#allocation2] sm:$0x3] %v1062_v4 }
   0x2   :  { %19 = vst [vmem:[#allocation2 + $0x2] sm:$0x3] %v1062_v4  ;;  %20 = vst [vmem:[#allocation2 + $0x4] sm:$0x3] %v1062_v4  ;;  %v930_v5 = vpack.c.bf16 %v31_v2, %v30_v1  ;;  %v46_v6 = vld [vmem:[%s1422_s1 + $0x80] sm:$0xff]  ;;  %v47_v7 = vld [vmem:[%s1422_s1 + $0x88] sm:$0xff]  ;;  %821 = vmatprep.mubr.msk.f32.mxu0 %vm1063_vm2, %v1062_v4  ;;  %856 = vmatprep.mubr.msk.f32.mxu1 %vm1063_vm2, %v1062_v4 }
   0x3   :  { %21 = vst [vmem:[#allocation2 + $0x6] sm:$0x3] %v1062_v4  ;;  %v962_v8 = vpack.c.bf16 %v47_v7, %v46_v6  ;;  %v32_v9 = vld [vmem:[%s1422_s1 + $0x10] sm:$0xff]  ;;  %v33_v10 = vld [vmem:[%s1422_s1 + $0x18] sm:$0xff]  ;;  %v34_v15 = vld [vmem:[%s1422_s1 + $0x20] sm:$0xff] }
   0x4   :  { %932 = vmatpush3.bf16.xpose.msk.msra.mxu0 %vm1095_vm1, %v930_v5  ;;  %v48_v11 = vld [vmem:[%s1422_s1 + $0x90] sm:$0xff]  ;;  %v49_v12 = vld [vmem:[%s1422_s1 + $0x98] sm:$0xff]  ;;  %v934_v13 = vpack.c.bf16 %v33_v10, %v32_v9  ;;  %v35_v16 = vld [vmem:[%s1422_s1 + $0x28] sm:$0xff] }
   0x5   :  { %964 = vmatpush3.bf16.xpose.msk.msra.mxu1 %vm1095_vm1, %v962_v8  ;;  %933 = vmatprep.subr.bf16.mxu0 %v1061_v0  ;;  %v966_v14 = vpack.c.bf16 %v49_v12, %v48_v11  ;;  %v50_v17 = vld [vmem:[%s1422_s1 + $0xa0] sm:$0xff]  ;;  %v51_v18 = vld [vmem:[%s1422_s1 + $0xa8] sm:$0xff]  ;;  %v938_v19 = vpack.c.bf16 %v35_v16, %v34_v15  ;;  %v36_v21 = vld [vmem:[%s1422_s1 + $0x30] sm:$0xff] }
   0x6   :  { %965 = vmatprep.subr.bf16.mxu1 %v1061_v0  ;;  %v970_v20 = vpack.c.bf16 %v51_v18, %v50_v17  ;;  %v37_v22 = vld [vmem:[%s1422_s1 + $0x38] sm:$0xff]  ;;  %v52_v23 = vld [vmem:[%s1422_s1 + $0xb0] sm:$0xff]  ;;  %v38_v27 = vld [vmem:[%s1422_s1 + $0x40] sm:$0xff] }
   0x7   :  { %v53_v24 = vld [vmem:[%s1422_s1 + $0xb8] sm:$0xff]  ;;  %v942_v25 = vpack.c.bf16 %v37_v22, %v36_v21  ;;  %v39_v28 = vld [vmem:[%s1422_s1 + $0x48] sm:$0xff]  ;;  %v54_v29 = vld [vmem:[%s1422_s1 + $0xc0] sm:$0xff] }
   0x8   :  { %v974_v26 = vpack.c.bf16 %v53_v24, %v52_v23  ;;  %v55_v30 = vld [vmem:[%s1422_s1 + $0xc8] sm:$0xff]  ;;  %v946_v31 = vpack.c.bf16 %v39_v28, %v38_v27  ;;  %v40_v33 = vld [vmem:[%s1422_s1 + $0x50] sm:$0xff]  ;;  %v41_v34 = vld [vmem:[%s1422_s1 + $0x58] sm:$0xff] }
   0x9   :  { %v978_v32 = vpack.c.bf16 %v55_v30, %v54_v29  ;;  %v56_v35 = vld [vmem:[%s1422_s1 + $0xd0] sm:$0xff]  ;;  %v57_v36 = vld [vmem:[%s1422_s1 + $0xd8] sm:$0xff]  ;;  %v950_v37 = vpack.c.bf16 %v41_v34, %v40_v33  ;;  %v42_v39 = vld [vmem:[%s1422_s1 + $0x60] sm:$0xff] }
   0xa   :  { %v982_v38 = vpack.c.bf16 %v57_v36, %v56_v35  ;;  %v43_v40 = vld [vmem:[%s1422_s1 + $0x68] sm:$0xff]  ;;  %v58_v41 = vld [vmem:[%s1422_s1 + $0xe0] sm:$0xff]  ;;  %v44_v45 = vld [vmem:[%s1422_s1 + $0x70] sm:$0xff] }
   0xb   :  { %v59_v42 = vld [vmem:[%s1422_s1 + $0xe8] sm:$0xff]  ;;  %v954_v43 = vpack.c.bf16 %v43_v40, %v42_v39  ;;  %v45_v46 = vld [vmem:[%s1422_s1 + $0x78] sm:$0xff]  ;;  %v60_v47 = vld [vmem:[%s1422_s1 + $0xf0] sm:$0xff]  ;;  %v1064_v40 = vmov 1966171168  }
   0xc   :  { %936 = vmatpush3.bf16.xpose.msk.msra.mxu0 %vm1095_vm1, %v934_v13  ;;  %v986_v44 = vpack.c.bf16 %v59_v42, %v58_v41  ;;  %v61_v48 = vld [vmem:[%s1422_s1 + $0xf8] sm:$0xff]  ;;  %v958_v49 = vpack.c.bf16 %v45_v46, %v44_v45  ;;  %v62_v51 = vld [vmem:[%s1422_s1 + $0x100] sm:$0xff]  ;;  %v63_v52 = vld [vmem:[%s1422_s1 + $0x108] sm:$0xff]  ;;  %v605_v41 = vunpack.c.l.s4 %v1064_v40  ;;  %v607_v42 = vlaneseq }
   0xd   :  { %968 = vmatpush3.bf16.xpose.msk.msra.mxu1 %vm1095_vm1, %v966_v14  ;;  %937 = vmatprep.subr.bf16.mxu0 %v1061_v0  ;;  %v990_v50 = vpack.c.bf16 %v61_v48, %v60_v47  ;;  %v78_v53 = vld [vmem:[%s1422_s1 + $0x180] sm:$0xff]  ;;  %v79_v54 = vld [vmem:[%s1422_s1 + $0x188] sm:$0xff]  ;;  %v994_v56 = vpack.c.bf16 %v63_v52, %v62_v51  ;;  %v64_v59 = vld [vmem:[%s1422_s1 + $0x110] sm:$0xff] }
   0xe   :  { %969 = vmatprep.subr.bf16.mxu1 %v1061_v0  ;;  %v26_v55 = vld [vmem:[%s1423_s0] sm:$0x3]  ;;  %v27_v57 = vld [vmem:[%s1423_s0 + $0x2] sm:$0x3]  ;;  %v1026_v58 = vpack.c.bf16 %v79_v54, %v78_v53  ;;  %v65_v60 = vld [vmem:[%s1422_s1 + $0x118] sm:$0xff] }
   0xf   :  { %v80_v61 = vld [vmem:[%s1422_s1 + $0x190] sm:$0xff]  ;;  %v81_v62 = vld [vmem:[%s1422_s1 + $0x198] sm:$0xff]  ;;  %v998_v63 = vpack.c.bf16 %v65_v60, %v64_v59  ;;  %v66_v2 = vld [vmem:[%s1422_s1 + $0x120] sm:$0xff] }
  0x10   :  { %v1030_v1 = vpack.c.bf16 %v81_v62, %v80_v61  ;;  %v67_v5 = vld [vmem:[%s1422_s1 + $0x128] sm:$0xff]  ;;  %v68_v9 = vld [vmem:[%s1422_s1 + $0x130] sm:$0xff]  ;;  %v69_v10 = vld [vmem:[%s1422_s1 + $0x138] sm:$0xff] }
  0x11   :  { %v83_v6 = vld [vmem:[%s1422_s1 + $0x1a8] sm:$0xff]  ;;  %v1002_v7 = vpack.c.bf16 %v67_v5, %v66_v2  ;;  %v84_v11 = vld [vmem:[%s1422_s1 + $0x1b0] sm:$0xff]  ;;  %v85_v12 = vld [vmem:[%s1422_s1 + $0x1b8] sm:$0xff]  ;;  %v1006_v13 = vpack.c.bf16 %v69_v10, %v68_v9 }
  0x12   :  { %v1038_v14 = vpack.c.bf16 %v85_v12, %v84_v11  ;;  %v70_v15 = vld [vmem:[%s1422_s1 + $0x140] sm:$0xff]  ;;  %v71_v16 = vld [vmem:[%s1422_s1 + $0x148] sm:$0xff]  ;;  %v72_v21 = vld [vmem:[%s1422_s1 + $0x150] sm:$0xff] }
  0x13   :  { %v86_v17 = vld [vmem:[%s1422_s1 + $0x1c0] sm:$0xff]  ;;  %v87_v18 = vld [vmem:[%s1422_s1 + $0x1c8] sm:$0xff]  ;;  %v73_v22 = vld [vmem:[%s1422_s1 + $0x158] sm:$0xff] }
  0x14   :  { %940 = vmatpush3.bf16.xpose.msk.msra.mxu0 %vm1095_vm1, %v938_v19  ;;  %v1010_v19 = vpack.c.bf16 %v71_v16, %v70_v15  ;;  %v88_v23 = vld [vmem:[%s1422_s1 + $0x1d0] sm:$0xff]  ;;  %v89_v24 = vld [vmem:[%s1422_s1 + $0x1d8] sm:$0xff]  ;;  %v74_v27 = vld [vmem:[%s1422_s1 + $0x160] sm:$0xff] }
  0x15   :  { %972 = vmatpush3.bf16.xpose.msk.msra.mxu1 %vm1095_vm1, %v970_v20  ;;  %941 = vmatprep.subr.bf16.mxu0 %v1061_v0  ;;  %v1042_v20 = vpack.c.bf16 %v87_v18, %v86_v17  ;;  %v75_v28 = vld [vmem:[%s1422_s1 + $0x168] sm:$0xff]  ;;  %v90_v29 = vld [vmem:[%s1422_s1 + $0x1e0] sm:$0xff]  ;;  %v76_v33 = vld [vmem:[%s1422_s1 + $0x170] sm:$0xff] }
  0x16   :  { %973 = vmatprep.subr.bf16.mxu1 %v1061_v0  ;;  %v91_v30 = vld [vmem:[%s1422_s1 + $0x1e8] sm:$0xff]  ;;  %v77_v34 = vld [vmem:[%s1422_s1 + $0x178] sm:$0xff]  ;;  %v92_v35 = vld [vmem:[%s1422_s1 + $0x1f0] sm:$0xff] }
  0x17   :  { %v93_v36 = vld [vmem:[%s1422_s1 + $0x1f8] sm:$0xff]  ;;  %v29_v39 = vld [vmem:[%s1423_s0 + $0x6] sm:$0x3]  ;;  %v22_v45 = vld [vmem:[#allocation2] sm:$0x3] }
  0x18   :  { %v720_v3 = vld.sshfl [vmem:[%s1424_s2] sm:$0x33 pattern:$0x75316420]  ;;  %v25_v2 = vld [vmem:[#allocation2 + $0x6] sm:$0x3] }
  0x19   :  { %v23_v47 = vld [vmem:[#allocation2 + $0x2] sm:$0x3] }
  0x1c   :  { %944 = vmatpush3.bf16.xpose.msk.msra.mxu0 %vm1095_vm1, %v942_v25  ;;  %v1014_v25 = vpack.c.bf16 %v73_v22, %v72_v21 }
  0x1d   :  { %976 = vmatpush3.bf16.xpose.msk.msra.mxu1 %vm1095_vm1, %v974_v26  ;;  %945 = vmatprep.subr.bf16.mxu0 %v1061_v0  ;;  %v1046_v26 = vpack.c.bf16 %v89_v24, %v88_v23 }
  0x1e   :  { %977 = vmatprep.subr.bf16.mxu1 %v1061_v0 }
  0x24   :  { %948 = vmatpush3.bf16.xpose.msk.msra.mxu0 %vm1095_vm1, %v946_v31  ;;  %v1018_v31 = vpack.c.bf16 %v75_v28, %v74_v27 }
  0x25   :  { %980 = vmatpush3.bf16.xpose.msk.msra.mxu1 %vm1095_vm1, %v978_v32  ;;  %949 = vmatprep.subr.bf16.mxu0 %v1061_v0  ;;  %v1050_v32 = vpack.c.bf16 %v91_v30, %v90_v29 }
  0x26   :  { %981 = vmatprep.subr.bf16.mxu1 %v1061_v0 }
  0x2c   :  { %952 = vmatpush3.bf16.xpose.msk.msra.mxu0 %vm1095_vm1, %v950_v37  ;;  %v1022_v37 = vpack.c.bf16 %v77_v34, %v76_v33 }
  0x2d   :  { %984 = vmatpush3.bf16.xpose.msk.msra.mxu1 %vm1095_vm1, %v982_v38  ;;  %953 = vmatprep.subr.bf16.mxu0 %v1061_v0  ;;  %v1054_v38 = vpack.c.bf16 %v93_v36, %v92_v35 }
  0x2e   :  { %985 = vmatprep.subr.bf16.mxu1 %v1061_v0 }
  0x34   :  { %956 = vmatpush3.bf16.xpose.msk.msra.mxu0 %vm1095_vm1, %v954_v43  ;;  %v606_v43 = vunpack.c.0.s8 %v605_v41 }
  0x35   :  { %988 = vmatpush3.bf16.xpose.msk.msra.mxu1 %vm1095_vm1, %v986_v44  ;;  %957 = vmatprep.subr.bf16.mxu0 %v1061_v0  ;;  %v608_v44 = vshrl.u32 %v607_v42, 7 }
  0x36   :  { %989 = vmatprep.subr.bf16.mxu1 %v1061_v0 }
  0x37   :  { %v609_v46 = vsub.s32 %v606_v43, %v608_v44 }
  0x3c   :  { %960 = vmatpush3.bf16.xpose.msk.msra.mxu0 %vm1095_vm1, %v958_v49  ;;  %v603_v49 = vcombine.high %v720_v3, %v720_v3 }
  0x3d   :  { %992 = vmatpush3.bf16.xpose.msk.msra.mxu1 %vm1095_vm1, %v990_v50  ;;  %993 = vmatprep.subr.bf16.mxu0 %v1061_v0 }
  0x3e   :  { %1025 = vmatprep.subr.bf16.mxu1 %v1061_v0 }
  0x43   :  { %822 = vmatmul.mubr.msk.f32.vlgmr.msra.gmra.mrb[0].mxu0 %vm94_vm0, %v26_v55  ;;  %v610_v55 = vrot.slane %v720_v3, %v609_v46 }
  0x44   :  { %857 = vmatmul.mubr.msk.f32.vlgmr.msra.gmra.mrb[0].mxu1 %vm94_vm0, %v27_v57  ;;  %996 = vmatpush3.bf16.xpose.msk.msra.mxu0 %vm1095_vm1, %v994_v56  ;;  %v622_v56 = vsub.s32 0, %v608_v44  ;;  %v617_v57 = vrot.slane %v603_v49, %v609_v46 }
  0x45   :  { %1028 = vmatpush3.bf16.xpose.msk.msra.mxu1 %vm1095_vm1, %v1026_v58  ;;  %997 = vmatprep.subr.bf16.mxu0 %v1061_v0  ;;  %v618_v10 = vcombine.high %v610_v55, %v610_v55 }
  0x46   :  { %1029 = vmatprep.subr.bf16.mxu1 %v1061_v0  ;;  %891 = vmatprep.mubr.msk.f32.mxu0 %vm1063_vm2, %v1062_v4  ;;  %v623_v58 = vrot.slane %v610_v55, %v622_v56  ;;  %v627_v59 = vrot.slane %v617_v57, %v622_v56  ;;  %v619_v11 = vcombine.high %v617_v57, %v617_v57 }
  0x47   :  { %926 = vmatprep.mubr.msk.f32.mxu1 %vm1063_vm2, %v1062_v4  ;;  %v82_v4 = vld [vmem:[%s1422_s1 + $0x1a0] sm:$0xff]  ;;  %v631_v12 = vrot.slane %v618_v10, %v622_v56 }
  0x48   :  { %v1034_v8 = vpack.c.bf16 %v83_v6, %v82_v4 }
  0x4c   :  { %1000 = vmatpush3.bf16.xpose.msk.msra.mxu0 %vm1095_vm1, %v998_v63 }
  0x4d   :  { %1032 = vmatpush3.bf16.xpose.msk.msra.mxu1 %vm1095_vm1, %v1030_v1  ;;  %1001 = vmatprep.subr.bf16.mxu0 %v1061_v0  ;;  %v24_v1 = vld [vmem:[#allocation2 + $0x4] sm:$0x3] }
  0x4e   :  { %1033 = vmatprep.subr.bf16.mxu1 %v1061_v0 }
  0x54   :  { %1004 = vmatpush3.bf16.xpose.msk.msra.mxu0 %vm1095_vm1, %v1002_v7 }
  0x55   :  { %1036 = vmatpush3.bf16.xpose.msk.msra.mxu1 %vm1095_vm1, %v1034_v8  ;;  %1005 = vmatprep.subr.bf16.mxu0 %v1061_v0 }
  0x56   :  { %1037 = vmatprep.subr.bf16.mxu1 %v1061_v0 }
  0x5c   :  { %1008 = vmatpush3.bf16.xpose.msk.msra.mxu0 %vm1095_vm1, %v1006_v13  ;;  %v635_v13 = vrot.slane %v619_v11, %v622_v56 }
  0x5d   :  { %1040 = vmatpush3.bf16.xpose.msk.msra.mxu1 %vm1095_vm1, %v1038_v14  ;;  %1009 = vmatprep.subr.bf16.mxu0 %v1061_v0 }
  0x5e   :  { %1041 = vmatprep.subr.bf16.mxu1 %v1061_v0 }
  0x64   :  { %1012 = vmatpush3.bf16.xpose.msk.msra.mxu0 %vm1095_vm1, %v1010_v19 }
  0x65   :  { %1044 = vmatpush3.bf16.xpose.msk.msra.mxu1 %vm1095_vm1, %v1042_v20  ;;  %1013 = vmatprep.subr.bf16.mxu0 %v1061_v0 }
  0x66   :  { %1045 = vmatprep.subr.bf16.mxu1 %v1061_v0 }
  0x6c   :  { %1016 = vmatpush3.bf16.xpose.msk.msra.mxu0 %vm1095_vm1, %v1014_v25 }
  0x6d   :  { %1048 = vmatpush3.bf16.xpose.msk.msra.mxu1 %vm1095_vm1, %v1046_v26  ;;  %1017 = vmatprep.subr.bf16.mxu0 %v1061_v0 }
  0x6e   :  { %1049 = vmatprep.subr.bf16.mxu1 %v1061_v0 }
  0x74   :  { %1020 = vmatpush3.bf16.xpose.msk.msra.mxu0 %vm1095_vm1, %v1018_v31 }
  0x75   :  { %1052 = vmatpush3.bf16.xpose.msk.msra.mxu1 %vm1095_vm1, %v1050_v32  ;;  %1021 = vmatprep.subr.bf16.mxu0 %v1061_v0 }
  0x76   :  { %1053 = vmatprep.subr.bf16.mxu1 %v1061_v0  ;;  %v28_v0 = vld [vmem:[%s1423_s0 + $0x4] sm:$0x3] }
  0x7c   :  { %1024 = vmatpush3.bf16.xpose.msk.msra.mxu0 %vm1095_vm1, %v1022_v37 }
  0x7d   :  { %1056 = vmatpush3.bf16.xpose.msk.msra.mxu1 %vm1095_vm1, %v1054_v38 }
  0x83   :  { %892 = vmatmul.mubr.msk.f32.vlgmr.msra.gmra.mrb[2].mxu0 %vm94_vm0, %v28_v0 }
  0x84   :  { %927 = vmatmul.mubr.msk.f32.vlgmr.msra.gmra.mrb[2].mxu1 %vm94_vm0, %v29_v39 }
 0x116   :  { %v212_v48 = vpop.f32.mrb[0].mxu0 }
 0x117   :  { %v579_v50 = vadd.f32 %v212_v48, %v22_v45  ;;  %v333_v51 = vpop.f32.mrb[0].mxu1  ;;  %v823_v52 = vpop.f32.mrb[1].mxu0 }
 0x118   :  { %v580_v53 = vadd.f32 %v333_v51, %v23_v47  ;;  %v858_v54 = vpop.f32.mrb[1].mxu1 }
 0x119   :  { %583 = vst [vmem:[#allocation2] sm:$0x3] %v579_v50 }
 0x11a   :  { %584 = vst [vmem:[#allocation2 + $0x2] sm:$0x3] %v580_v53 }
 0x120   :  { %v590_v60 = vld [vmem:[#allocation2] sm:$0x3] }
 0x121   :  { %v640_v61 = vadd.f32 %v623_v58, %v590_v60  ;;  %v591_v62 = vld [vmem:[#allocation2 + $0x2] sm:$0x3] }
 0x122   :  { %v641_v63 = vadd.f32 %v627_v59, %v591_v62 }
 0x123   :  { %644 = vst [vmem:[%s1425_s3] sm:$0x3] %v640_v61 }
 0x124   :  { %645 = vst [vmem:[%s1425_s3 + $0x2] sm:$0x3] %v641_v63 }
 0x156   :  { %v454_v5 = vpop.f32.mrb[2].mxu0 }
 0x157   :  { %v581_v4 = vadd.f32 %v454_v5, %v24_v1  ;;  %v575_v6 = vpop.f32.mrb[2].mxu1  ;;  %v893_v7 = vpop.f32.mrb[3].mxu0 }
 0x158   :  { %v582_v8 = vadd.f32 %v575_v6, %v25_v2  ;;  %v928_v9 = vpop.f32.mrb[3].mxu1 }
 0x159   :  { %585 = vst [vmem:[#allocation2 + $0x4] sm:$0x3] %v581_v4 }
 0x15a   :  { %586 = vst [vmem:[#allocation2 + $0x6] sm:$0x3] %v582_v8 }
 0x160   :  { %v592_v14 = vld [vmem:[#allocation2 + $0x4] sm:$0x3] }
 0x161   :  { %v642_v15 = vadd.f32 %v631_v12, %v592_v14  ;;  %v593_v16 = vld [vmem:[#allocation2 + $0x6] sm:$0x3] }
 0x162   :  { %v643_v17 = vadd.f32 %v635_v13, %v593_v16 }
 0x163   :  { %646 = vst [vmem:[%s1425_s3 + $0x4] sm:$0x3] %v642_v15 }
 0x164   :  { %647 = vst [vmem:[%s1425_s3 + $0x6] sm:$0x3] %v643_v17 }

</bundles_post_ra>
